<compile_context>
chip_gen: v7x
topology: tpu7x:2x2x1
jax: 0.10.0
libtpu: 0.0.40
codegen_flags: <defaults>
</compile_context>

<pallas_src>
import jax
import jax.numpy as jnp
from jax.experimental import pallas as pl
from jax.experimental.pallas import tpu as pltpu


def _conv1x1_m1_kernel(x_ref, w_ref, b_ref, o_ref):
    # x_ref: (1, Cin)     -- single pixel's channel vector (lane dim = Cin)
    # w_ref: (Cout, Cin)  -- natural PyTorch layout (no transpose)
    # b_ref: (Cout, 1)
    # o_ref: (Cout, 1)
    prod = w_ref[...] * x_ref[...]                       # (Cout, Cin) on VPU
    red = jnp.sum(prod, axis=-1, keepdims=True)          # (Cout, 1) lane-reduce (XLU)
    o_ref[...] = (red + b_ref[...]).astype(o_ref.dtype)


def conv2d_1x1(x_nchw, weight, bias):
    """1x1 stride-1 conv with bias for a single spatial position.

    x_nchw: (N, Cin, H, W) float32 with N*H*W == 1
    weight: (Cout, Cin, 1, 1) float32
    bias:   (Cout,) float32
    returns (N, Cout, H, W) float32
    """
    n, cin, h, w = x_nchw.shape
    cout = weight.shape[0]
    m = n * h * w
    assert m == 1, "this kernel specializes the module's M=1 (N=H=W=1) case"

    # Pure reshapes (no transposes): with H=W=1 only channels vary.
    x_row = x_nchw.reshape(m, cin)          # (1, Cin)
    w_mat = weight.reshape(cout, cin)       # (Cout, Cin) -- keep PyTorch layout
    b_col = bias.reshape(cout, 1)           # (Cout, 1)

    out = pl.pallas_call(
        _conv1x1_m1_kernel,
        out_shape=jax.ShapeDtypeStruct((cout, 1), x_nchw.dtype),
        in_specs=[
            pl.BlockSpec(memory_space=pltpu.MemorySpace.VMEM),
            pl.BlockSpec(memory_space=pltpu.MemorySpace.VMEM),
            pl.BlockSpec(memory_space=pltpu.MemorySpace.VMEM),
        ],
        out_specs=pl.BlockSpec(memory_space=pltpu.MemorySpace.VMEM),
    )(x_row, w_mat, b_col)

    # (Cout, 1) -> (N, Cout, H, W): pure reshape.
    return out.reshape(n, cout, h, w)


if __name__ == "__main__":
    key = jax.random.PRNGKey(0)
    k_x, k_w, k_b = jax.random.split(key, 3)

    N, CIN, H, W, COUT = 1, 528, 1, 1, 22

    x137 = jax.random.normal(k_x, (N, CIN, H, W), dtype=jnp.float32)
    # Deterministic parameter init (mimic PyTorch Conv2d default U(-k, k), k=1/sqrt(fan_in)).
    k = 1.0 / jnp.sqrt(jnp.float32(CIN * 1 * 1))
    weight = jax.random.uniform(k_w, (COUT, CIN, 1, 1), dtype=jnp.float32,
                                minval=-k, maxval=k)
    bias = jax.random.uniform(k_b, (COUT,), dtype=jnp.float32,
                              minval=-k, maxval=k)

    y = conv2d_1x1(x137, weight, bias)
    y = jax.block_until_ready(y)

    # Reference check in plain JAX.
    ref = jnp.einsum("nihw,oi->nohw", x137, weight.reshape(COUT, CIN)) \
          + bias.reshape(1, COUT, 1, 1)
    assert y.shape == (N, COUT, H, W), y.shape
    assert jnp.allclose(y, ref, atol=1e-5, rtol=1e-5), float(jnp.max(jnp.abs(y - ref)))

    print("KERNEL_OK")
</pallas_src>

<mosaic_0001>
module attributes {stable_mosaic.version = 11 : i64} {
  func.func @_conv1x1_m1_kernel(%arg0: memref<1x528xf32, #tpu.memory_space<vmem>>, %arg1: memref<22x528xf32, #tpu.memory_space<vmem>>, %arg2: memref<22x1xf32, #tpu.memory_space<vmem>>, %arg3: memref<22x1xf32, #tpu.memory_space<vmem>>) attributes {dimension_semantics = [], scalar_prefetch = 0 : i64, scratch_operands = 0 : i64, tpu.core_type = #tpu.core_type<tc>} {
    %c0 = arith.constant 0 : index
    %c0_0 = arith.constant 0 : index
    %0 = vector.load %arg1[%c0, %c0_0] : memref<22x528xf32, #tpu.memory_space<vmem>>, vector<22x528xf32>
    %c0_1 = arith.constant 0 : index
    %c0_2 = arith.constant 0 : index
    %1 = vector.load %arg0[%c0_1, %c0_2] : memref<1x528xf32, #tpu.memory_space<vmem>>, vector<1x528xf32>
    %2 = vector.broadcast %1 : vector<1x528xf32> to vector<22x528xf32>
    %3 = arith.mulf %0, %2 : vector<22x528xf32>
    %cst = arith.constant dense<0.000000e+00> : vector<22xf32>
    %4 = vector.multi_reduction <add>, %3, %cst [1] : vector<22x528xf32> to vector<22xf32>
    %5 = vector.shape_cast %4 : vector<22xf32> to vector<22x1xf32>
    %c0_3 = arith.constant 0 : index
    %c0_4 = arith.constant 0 : index
    %6 = vector.load %arg2[%c0_3, %c0_4] : memref<22x1xf32, #tpu.memory_space<vmem>>, vector<22x1xf32>
    %7 = arith.addf %5, %6 : vector<22x1xf32>
    %c0_5 = arith.constant 0 : index
    %c0_6 = arith.constant 0 : index
    %8 = vector.load %arg3[%c0_5, %c0_6] : memref<22x1xf32, #tpu.memory_space<vmem>>, vector<22x1xf32>
    tpu.vector_store %arg3[%c0_5, %c0_6], %7 {strides = array<i32>} : memref<22x1xf32, #tpu.memory_space<vmem>>, vector<22x1xf32>,
    return
  }
}

</mosaic_0001>

<bundles_post_ra>
// kernel: tpu_custom_call.1
= control target key start
LH: loop header
LB: loop body
LE: loop exit
PB: predicated region body
PF: predicated region fallthrough
CT: control target
= control target key end

     0   :  { %8 = vsyncpa [#allocation3], 0  ;;  %s156_s12 = smov [#allocation2]   ;;  %s218_s0 = inlined_call_operand.vmem [shape: f32[1,528], index: 0, kind: input, shape index: {}]   ;;  %s219_s1 = inlined_call_operand.hbm [shape: f32[22,528], index: 1, kind: input, shape index: {}]   ;;  %s220_s2 = inlined_call_operand.vmem [shape: f32[22,1], index: 2, kind: input, shape index: {}]   ;;  %s221_s3 = inlined_call_operand.vmem [shape: f32[22,1], index: 3, kind: output, shape index: {}]  }
   0x1   :  { %s16_s13 = sshll.u32 %s156_s12, 4  ;;  %s132_s16 = scalar_lea.hbm %s219_s1, 1920  ;;  %s17_s13 = int_to_ptr.vmem [resolvable:$true] %s16_s13 }
   0x2   :  { %p133_p0 = scmp.ne.s32.totalorder %s219_s1, %s132_s16  ;;  %p136_p1 = scmp.lt.u32.totalorder %s132_s16, %s219_s1 }
   0x4   :  { %p138_p2 = pnand %p136_p1, %p133_p0 }
   0x6   :  { %141 = shalt.err (!%p138_p2)
}
   0x7   :  { %s142_s21 = scalar_lea.vmem %s17_s13, 1920  ;;  %p147_p4 = scmp.lt.s32.totalorder %s17_s13, %s17_s13 }
   0x8   :  { %p143_p3 = scmp.ne.s32.totalorder %s17_s13, %s142_s21  ;;  %p148_p5 = scmp.lt.s32.totalorder %s142_s21, %s142_s21 }
   0xa   :  { %p149_p6 = por %p148_p5, %p147_p4 }
   0xc   :  { %p150_p7 = pnand %p149_p6, %p143_p3 }
   0xe   :  { %153 = shalt.err (!%p150_p7)
}
   0xf   :  { %s157_s22 = smov 640   ;;  %s158_s23 = smov 40  }
  0x10   :  { %22 = dma.hbm_to_vmem [thread:$0]  %s219_s1, 1920, %s17_s13, [#allocation3], %s157_s22, %s157_s22, %s158_s23  }
  0x11   :  { %154 = dma.done.wait [#allocation3], 1920  }
  0x12   :  { %155 = vsyncadd [#allocation3], 4294965376  ;;  %v45_v0 = vlaneseq  ;;  %v28_v7 = vld [vmem:[#allocation2] sm:$0xff]  ;;  %v29_v8 = vld [vmem:[#allocation2 + $0x8] sm:$0xff]  ;;  %vm88_vm0 = vcmask 130048   ;;  %vm100_vm1 = vcmask 1045504  }
  0x13   :  { %v30_v9 = vld [vmem:[#allocation2 + $0x10] sm:$0xff]  ;;  %v32_v10 = vld [vmem:[#allocation2 + $0x20] sm:$0xff]  ;;  %v39_v17 = vld [vmem:[#allocation2 + $0x58] sm:$0x3f]  ;;  %vm108_vm2 = vcmask 128000   ;;  %vm119_vm3 = vcmask 7168  }
  0x14   :  { %v46_v1 = vshrl.u32 %v45_v0, 7  ;;  %v43_v11 = vld [vmem:[%s218_s0] sm:$0x1f]  ;;  %v38_v16 = vld [vmem:[#allocation2 + $0x50] sm:$0x3f]  ;;  %v31_v19 = vld [vmem:[#allocation2 + $0x18] sm:$0xff] }
  0x15   :  { %v40_v18 = vld [vmem:[#allocation2 + $0x60] sm:$0x3f]  ;;  %v41_v21 = vld [vmem:[#allocation2 + $0x68] sm:$0x3f]  ;;  %v42_v22 = vld [vmem:[#allocation2 + $0x70] sm:$0x3f] }
  0x16   :  { %v47_v2 = vsub.s32 0, %v46_v1  ;;  %v51_v3 = vsub.s32 1, %v46_v1  ;;  %v55_v4 = vsub.s32 2, %v46_v1  ;;  %v59_v5 = vsub.s32 3, %v46_v1  ;;  %v33_v26 = vld [vmem:[#allocation2 + $0x28] sm:$0xff]  ;;  %v34_v35 = vld [vmem:[#allocation2 + $0x30] sm:$0xff] }
  0x17   :  { %v63_v6 = vsub.s32 4, %v46_v1  ;;  %v35_v36 = vld [vmem:[#allocation2 + $0x38] sm:$0xff]  ;;  %v37_v40 = vld [vmem:[#allocation2 + $0x48] sm:$0xff]  ;;  %v36_v44 = vld [vmem:[#allocation2 + $0x40] sm:$0xff]  ;;  %vm122_vm4 = vcmask 5120  }
  0x18   :  { %v48_v12 = vrot.slane %v43_v11, %v47_v2  ;;  %v52_v13 = vrot.slane %v43_v11, %v51_v3  ;;  %v56_v14 = vrot.slane %v43_v11, %v55_v4  ;;  %v60_v15 = vrot.slane %v43_v11, %v59_v5  ;;  %v113_v62 = vld [vmem:[%s220_s2] sm:$0xff]  ;;  %v115_v0 = vld [vmem:[%s220_s2 + $0x10] sm:$0x3f]  ;;  %v114_v4 = vld [vmem:[%s220_s2 + $0x8] sm:$0xff] }
  0x19   :  { %v64_v20 = vrot.slane %v43_v11, %v63_v6 }
  0x1a   :  { %v70_v23 = vmul.f32 %v48_v12, %v28_v7  ;;  %v71_v24 = vmul.f32 %v52_v13, %v29_v8  ;;  %v72_v25 = vmul.f32 %v56_v14, %v30_v9  ;;  %v80_v28 = vmul.f32 %v48_v12, %v38_v16 }
  0x1b   :  { %v74_v27 = vmul.f32 %v64_v20, %v32_v10  ;;  %v81_v29 = vmul.f32 %v52_v13, %v39_v17  ;;  %v82_v30 = vmul.f32 %v56_v14, %v40_v18  ;;  %v73_v31 = vmul.f32 %v60_v15, %v31_v19 }
  0x1c   :  { %v85_v32 = vadd.f32 %v71_v24, %v70_v23  ;;  %v83_v33 = vmul.f32 %v60_v15, %v41_v21  ;;  %v84_v34 = vmul.f32 %v64_v20, %v42_v22  ;;  %v101_v37 = vsel %vm100_vm1, %v80_v28, 0.0 }
  0x1d   :  { %v102_v38 = vsel %vm100_vm1, %v81_v29, 0.0  ;;  %v104_v39 = vsel %vm100_vm1, %v82_v30, 0.0  ;;  %v75_v41 = vmul.f32 %v48_v12, %v33_v26  ;;  %v89_v45 = vsel %vm88_vm0, %v74_v27, 0.0 }
  0x1e   :  { %v86_v42 = vadd.f32 %v85_v32, %v72_v25  ;;  %v103_v43 = vadd.f32 %v102_v38, %v101_v37  ;;  %v106_v46 = vsel %vm100_vm1, %v83_v33, 0.0  ;;  %v76_v47 = vmul.f32 %v52_v13, %v34_v35 }
  0x1f   :  { %v77_v48 = vmul.f32 %v56_v14, %v35_v36  ;;  %v79_v51 = vmul.f32 %v64_v20, %v37_v40  ;;  %v109_v52 = vsel %vm108_vm2, %v84_v34, 0.0  ;;  %v78_v53 = vmul.f32 %v60_v15, %v36_v44 }
  0x20   :  { %v87_v49 = vadd.f32 %v86_v42, %v73_v31  ;;  %v105_v50 = vadd.f32 %v104_v39, %v103_v43  ;;  %v93_v54 = vadd.f32 %v76_v47, %v75_v41 }
  0x21   :  { %v96_v59 = vsel %vm88_vm0, %v79_v51, 0.0 }
  0x22   :  { %v90_v55 = vadd.f32 %v89_v45, %v87_v49  ;;  %v107_v56 = vadd.f32 %v106_v46, %v105_v50  ;;  %v94_v57 = vadd.f32 %v93_v54, %v77_v48 }
  0x24   :  { %91 = vadd.xlane.f32.xlu0 %v90_v55  ;;  %v110_v58 = vadd.f32 %v109_v52, %v107_v56  ;;  %v95_v60 = vadd.f32 %v94_v57, %v78_v53 }
  0x26   :  { %111 = vadd.xlane.f32.xlu1 %v110_v58  ;;  %v97_v61 = vadd.f32 %v96_v59, %v95_v60 }
  0x28   :  { %98 = vadd.xlane.f32.xlu0 %v97_v61 }
  0xb1   :  { %v92_v63 = vpop.xlane.xlu0 %91 }
  0xb2   :  { %v116_v1 = vadd.f32 %v113_v62, %v92_v63 }
  0xb3   :  { %v112_v2 = vpop.xlane.xlu1 %111 }
  0xb4   :  { %120 = vst.msk [vmem:[%s221_s3] sm:$0xff] %vm119_vm3, %v116_v1  ;;  %v118_v3 = vadd.f32 %v115_v0, %v112_v2 }
  0xb5   :  { %v99_v5 = vpop.xlane.xlu0 %98 }
  0xb6   :  { %123 = vst.msk [vmem:[%s221_s3 + $0x10] sm:$0x3f] %vm122_vm4, %v118_v3  ;;  %v117_v6 = vadd.f32 %v114_v4, %v99_v5 }
  0xb8   :  { %121 = vst.msk [vmem:[%s221_s3 + $0x8] sm:$0xff] %vm119_vm3, %v117_v6 }
  0xb9   :  { %128 = vsyncpa [#allocation3], 1 }

</bundles_post_ra>
